<compile_context>
chip_gen: v7x
topology: tpu7x:2x2x1
jax: 0.10.0
libtpu: 0.0.40
codegen_flags: <defaults>
</compile_context>

<pallas_src>
import jax
import jax.numpy as jnp
from jax.experimental import pallas as pl
from jax.experimental.pallas import tpu as pltpu


def _round_up(a, b):
    return (a + b - 1) // b * b


def gem_heat_kernel(w_ref, x_ref, o_ref):
    # w_ref: (D, 1) VMEM, x_ref: (TM, D) VMEM, o_ref: (TM, 1) VMEM
    # Single MXU matvec per tile; f32 accumulation, native-dtype inputs.
    o_ref[...] = jnp.dot(
        x_ref[...], w_ref[...], preferred_element_type=jnp.float32
    ).astype(o_ref.dtype)


def gem_heat(x, p, *, tm=2048):
    """x: (B, N, D) array, p: (D,) parameter vector. Returns (B, N)."""
    B, N, D = x.shape
    M = B * N
    itemsize = jnp.dtype(x.dtype).itemsize

    # Hoisted: softmax over the feature dim, computed once in f32 for
    # numerical stability, then matched to x's dtype for the MXU matvec.
    w = jax.nn.softmax(p.astype(jnp.float32), axis=-1)
    w = w.reshape(D, 1).astype(x.dtype)

    # Row-tile size:
    #  - multiple of 8 sublanes,
    #  - small enough that the grid has >= ~4 steps (keeps both v7x TCs busy),
    #  - per-buffer bytes <= ~8 MiB so 2x buffers fit every chip's scoped VMEM.
    tm_eff = max(8, min(tm, _round_up(pl.cdiv(M, 4), 8)))
    max_tile_bytes = 8 << 20
    max_tm_for_vmem = max(8, (max_tile_bytes // (D * itemsize)) // 8 * 8)
    tm_eff = min(tm_eff, max_tm_for_vmem)

    x2 = x.reshape(M, D)
    grid = (pl.cdiv(M, tm_eff),)  # ragged final block handled by Pallas

    out = pl.pallas_call(
        gem_heat_kernel,
        out_shape=jax.ShapeDtypeStruct((M, 1), x.dtype),
        grid=grid,
        in_specs=[
            pl.BlockSpec((D, 1), lambda i: (0, 0)),        # w (whole vector)
            pl.BlockSpec((tm_eff, D), lambda i: (i, 0)),   # x row tile
        ],
        out_specs=pl.BlockSpec((tm_eff, 1), lambda i: (i, 0)),
        compiler_params=pltpu.CompilerParams(
            dimension_semantics=("parallel",),
            vmem_limit_bytes=32 << 20,
        ),
        cost_estimate=pl.CostEstimate(
            flops=2 * M * D,
            transcendentals=0,
            bytes_accessed=M * D * itemsize + M * itemsize + D * itemsize,
        ),
    )(w, x2)
    return out.reshape(B, N)


if __name__ == "__main__":
    key = jax.random.PRNGKey(0)
    B, N, D = 2, 8, 32  # small shapes; module default dim=768 scales identically

    kx, _ = jax.random.split(key)
    x = jax.random.normal(kx, (B, N, D), dtype=jnp.float32)
    # deterministic parameter init, matching nn.Parameter(torch.ones(dim) * 3)
    p = jnp.ones((D,), dtype=jnp.float32) * 3.0

    out = gem_heat(x, p)
    jax.block_until_ready(out)

    # pure-JAX reference check
    w_ref = jax.nn.softmax(p)
    ref = jnp.einsum("bnd,d->bn", x, w_ref)
    assert out.shape == (B, N)
    assert jnp.allclose(out, ref, atol=1e-5), "mismatch vs reference"

    # second check with M not divisible by the tile size (exercises the
    # ragged final-block path of the cdiv grid)
    B2, N2 = 3, 7
    x2 = jax.random.normal(key, (B2, N2, D), dtype=jnp.float32)
    out2 = gem_heat(x2, p, tm=8)
    jax.block_until_ready(out2)
    ref2 = jnp.einsum("bnd,d->bn", x2, w_ref)
    assert out2.shape == (B2, N2)
    assert jnp.allclose(out2, ref2, atol=1e-5), "mismatch vs reference (ragged)"

    print("KERNEL_OK")
</pallas_src>

<mosaic_0001>
module attributes {stable_mosaic.version = 11 : i64} {
  func.func @gem_heat_kernel(%arg0: i32, %arg1: memref<32x1xf32, #tpu.memory_space<vmem>>, %arg2: memref<8x32xf32, #tpu.memory_space<vmem>>, %arg3: memref<8x1xf32, #tpu.memory_space<vmem>>) attributes {dimension_semantics = [#tpu.dimension_semantics<parallel>], iteration_bounds = array<i64: 2>, scalar_prefetch = 0 : i64, scratch_operands = 0 : i64, tpu.core_type = #tpu.core_type<tc>, window_params = [{pipeline_mode = #tpu.pipeline_mode<synchronous>, transform_indices = @transform_0, window_bounds = array<i64: 32, 1>}, {transform_indices = @transform_1, window_bounds = array<i64: 8, 32>}, {transform_indices = @transform_2, window_bounds = array<i64: 8, 1>}]} {
    %c0 = arith.constant 0 : index
    %c0_0 = arith.constant 0 : index
    %0 = vector.load %arg2[%c0, %c0_0] : memref<8x32xf32, #tpu.memory_space<vmem>>, vector<8x32xf32>
    %c0_1 = arith.constant 0 : index
    %c0_2 = arith.constant 0 : index
    %1 = vector.load %arg1[%c0_1, %c0_2] : memref<32x1xf32, #tpu.memory_space<vmem>>, vector<32x1xf32>
    %cst = arith.constant dense<0.000000e+00> : vector<8x1xf32>
    %2 = tpu.matmul %0, %1, %cst {dimension_numbers = #tpu.dot_dimension_numbers<[1], [0], [0], [1], [0, 0, 1, 1], [], []>} : vector<8x32xf32>, vector<32x1xf32>, vector<8x1xf32> -> vector<8x1xf32>
    %c0_3 = arith.constant 0 : index
    %c0_4 = arith.constant 0 : index
    %3 = vector.load %arg3[%c0_3, %c0_4] : memref<8x1xf32, #tpu.memory_space<vmem>>, vector<8x1xf32>
    tpu.vector_store %arg3[%c0_3, %c0_4], %2 {strides = array<i32>} : memref<8x1xf32, #tpu.memory_space<vmem>>, vector<8x1xf32>,
    return
  }
  func.func @transform_0(%arg0: i32) -> (i32, i32) {
    %c0_i32 = arith.constant 0 : i32
    %c0_i32_0 = arith.constant 0 : i32
    %c0_i32_1 = arith.constant 0 : i32
    return %c0_i32, %c0_i32_0 : i32, i32
  }
  func.func @transform_1(%arg0: i32) -> (i32, i32) {
    %c0_i32 = arith.constant 0 : i32
    %c0_i32_0 = arith.constant 0 : i32
    return %arg0, %c0_i32 : i32, i32
  }
  func.func @transform_2(%arg0: i32) -> (i32, i32) {
    %c0_i32 = arith.constant 0 : i32
    %c0_i32_0 = arith.constant 0 : i32
    return %arg0, %c0_i32 : i32, i32
  }
}

</mosaic_0001>

<bundles_post_ra>
// kernel: tpu_custom_call.1
= control target key start
LH: loop header
LB: loop body
LE: loop exit
PB: predicated region body
PF: predicated region fallthrough
CT: control target
= control target key end

     0   :  { %s342_s9 = smov 0   ;;  %s371_s0 = inlined_call_operand.vmem [shape: f32[32,1], index: 0, kind: input, shape index: {}]   ;;  %s372_s1 = inlined_call_operand.vmem [shape: f32[16,32], index: 1, kind: input, shape index: {}]   ;;  %s373_s2 = inlined_call_operand.vmem [shape: f32[16,1], index: 2, kind: output, shape index: {}]  }
   0x1 LB: > { %s273_s10 = sadd.s32 4294967295, %s322_s9   ;;  %p277_p0 = scmp.ge.s32.totalorder %s322_s9, 1  ;;  %s322_s9 = sphi %s342_s9, %s12_s9  }
   0x2   : > { %p111_p1 = scmp.lt.s32.totalorder %s322_s9, 3 }
   0x4   : > { %p112_p2 = pnand %p277_p0, %p111_p1 }
   0x5   : > { %v140_v0 = vld [vmem:[%s371_s0] sm:$0xff] (!%p112_p2)  ;;  %v141_v1 = vld [vmem:[%s371_s0 + $0x8] sm:$0xff] (!%p112_p2)  ;;  %v142_v2 = vld [vmem:[%s371_s0 + $0x10] sm:$0xff] (!%p112_p2)  ;;  %v324_v3 = vmov (!%p112_p2), 0.0|0.0   ;;  %vm325_vm0 = vmmov (!%p112_p2), 0   ;;  %v326_v6 = vmov (!%p112_p2), 0.0  }
   0x6   : > { %115 = sbr.rel (%p112_p2) target bundleno = 230 (0xe6), region = 28  ;;  %299 = vmatprep.subr.bf16.mxu0 (!%p112_p2), %v324_v3  ;;  %v300_v4 = vpack.c.bf16 (!%p112_p2), %v141_v1, %v140_v0  ;;  %v143_v5 = vld [vmem:[%s371_s0 + $0x18] sm:$0xff] (!%p112_p2)  ;;  %296 = vmatprep.mubr.msk.f32.mxu0 (!%p112_p2), %vm325_vm0, %v326_v6  ;;  %p131_p3 = scmp.lt.s32.totalorder (!%p112_p2), %s273_s10, 1  ;;  %vm144_vm1 = vcmask (!%p112_p2), 261120   ;;  %vm218_vm2 = vcmask (!%p112_p2), 7168  }
   0x7   : > { %v303_v7 = vpack.c.bf16 (!%p112_p2), %v143_v5, %v142_v2 }
   0x8   : > { %301 = vmatpush3.bf16.msra.mxu0 (!%p112_p2), %v300_v4 }
   0x9   : > { %302 = vmatprep.subr.bf16.mxu0 (!%p112_p2), %v324_v3 }
   0xc   : > { %304 = vmatpush3.bf16.msra.mxu0 (!%p112_p2), %v303_v7 }
   0xd   : > { %s375_s10 = smov (!%p131_p3, %s273_s10), 1 }
   0xe   : > { %s278_s19 = sshll.u32 %s375_s10, 3 }
   0xf   : > { %s134_s22 = scalar_lea.vmem %s372_s1, %s278_s19  ;;  %s138_s25 = scalar_lea.vmem %s373_s2, %s278_s19 }
  0x10   : > { %v139_v8 = vld [vmem:[%s134_s22] sm:$0xff] }
  0x11   : > { %297 = vmatmul.mubr.msk.f32.vlgmr.msra.gmra.mrb[0].mxu0 %vm144_vm1, %v139_v8 }
  0xe4   : > { %v214_v9 = vpop.f32.mrb[0].mxu0 }
  0xe5   : > { %219 = vst.msk [vmem:[%s138_s25] sm:$0xff] %vm218_vm2, %v214_v9  ;;  %v298_v10 = vpop.f32.mrb[1].mxu0 }
  0xe6 PF: > { %s12_s9 = sadd.s32 1, %s322_s9  }
  0xe7   : > { %p9_p4 = scmp.ge.s32.totalorder %s12_s9, 4  }
  0xe9   :  { %11 = sbr.rel (!%p9_p4) target bundleno = 1 (0x1), region = 58 }

</bundles_post_ra>
